<compile_context>
chip_gen: v7x
topology: tpu7x:2x2x1
jax: 0.10.0
libtpu: 0.0.40
codegen_flags: <defaults>
</compile_context>

<pallas_src>
import functools

import jax
import jax.numpy as jnp
import numpy as np
from jax.experimental import pallas as pl
from jax.experimental.pallas import tpu as pltpu


# ---------------------------------------------------------------------------
# Hardware-aware knobs
# ---------------------------------------------------------------------------

def _vmem_capacity_bytes():
    try:
        return int(pltpu.get_tpu_info().vmem_capacity_bytes)
    except Exception:
        return 64 * 1024 * 1024      # conservative default (v7x-sized)


# ---------------------------------------------------------------------------
# Kernel 1: 1x1 conv + folded BN + ReLU6 (bf16 MXU) + fused SE pooling sums
# ---------------------------------------------------------------------------

def _conv1x1_kernel(x_ref, w_ref, shift_ref, o_ref, sum_ref, *, hw, tm):
    t = pl.program_id(1)

    # 1x1 conv == matmul over channels; BN scale folded into w, shift added here.
    y = jnp.dot(x_ref[0], w_ref[...], preferred_element_type=jnp.float32)
    y = jnp.clip(y + shift_ref[...], 0.0, 6.0)                 # (TM, C) fp32
    o_ref[0] = y.astype(o_ref.dtype)                           # bf16 store

    # SE global-average-pool partial sums (masked for the ragged last tile) —
    # avoids an extra HBM pass over c0/c1 in the wrapper.
    @pl.when(t == 0)
    def _():
        sum_ref[...] = jnp.zeros_like(sum_ref)

    valid = hw - t * tm
    mask = jax.lax.broadcasted_iota(jnp.int32, (tm, 1), 0) < valid
    part = jnp.sum(jnp.where(mask, y, 0.0), axis=0, keepdims=True)   # (1, C)
    sum_ref[0] = sum_ref[0] + part


def conv1x1_bn_relu6(x3d, w_bf16, shift):
    """x3d: (B, HW, Cin) bf16, w_bf16: (Cin, C) bf16 (BN scale pre-folded).

    Returns (c, sums): c (B, HW, C) bf16, sums (B, 1, C) fp32 (per-image sum
    of c over the HW axis, for SE pooling)."""
    B, HW, Cin = x3d.shape
    C = w_bf16.shape[1]

    TM = HW if HW <= 1024 else 1024          # 512-1024 row sweet spot; 1024 % 8 == 0
    grid = (B, pl.cdiv(HW, TM))

    kernel = functools.partial(_conv1x1_kernel, hw=HW, tm=TM)
    return pl.pallas_call(
        kernel,
        out_shape=(jax.ShapeDtypeStruct((B, HW, C), jnp.bfloat16),
                   jax.ShapeDtypeStruct((B, 1, C), jnp.float32)),
        grid_spec=pltpu.PrefetchScalarGridSpec(
            num_scalar_prefetch=0,
            grid=grid,
            in_specs=[
                pl.BlockSpec((1, TM, Cin), lambda b, t: (b, t, 0)),
                pl.BlockSpec((Cin, C), lambda b, t: (0, 0)),    # weights resident
                pl.BlockSpec((1, C), lambda b, t: (0, 0)),
            ],
            out_specs=[
                pl.BlockSpec((1, TM, C), lambda b, t: (b, t, 0)),
                pl.BlockSpec((1, 1, C), lambda b, t: (b, 0, 0)),  # accumulator
            ],
        ),
        compiler_params=pltpu.CompilerParams(
            dimension_semantics=("parallel", "arbitrary")),
    )(x3d, w_bf16, shift.reshape(1, C))


# ---------------------------------------------------------------------------
# Kernel 2: fused upsample + weight-level convs + softmax + SE gate + concat
# ---------------------------------------------------------------------------

def _nearest_matrix(rows_out, w_out, f):
    """0/1 selection matrix E so that (E @ src_flat) equals the nearest-neighbour
    upsample (factor f) of src, both flattened row-major over (rows, cols)."""
    w_in = w_out // f
    P = rows_out * w_out
    Q = (rows_out // f) * w_in
    p = np.arange(P)
    src = (p // w_out // f) * w_in + (p % w_out) // f
    E = np.zeros((P, Q), dtype=np.float32)
    E[p, src] = 1.0
    return E


def _asff_fused_kernel(e0_ref, e1_ref, c0_ref, c1_ref, x2_ref,
                       y0_ref, y1_ref, y2_ref,
                       wlw_ref, wlsh_ref, wfw_ref, wfb_ref,
                       o_ref):
    C = x2_ref.shape[1]

    # Nearest-neighbour x4 / x2 upsample as bf16 0/1 selection matmuls (each
    # output row copies exactly one source row, so bf16 accumulation is exact).
    r0 = jnp.dot(e0_ref[...], c0_ref[...], preferred_element_type=jnp.bfloat16)
    r1 = jnp.dot(e1_ref[...], c1_ref[...], preferred_element_type=jnp.bfloat16)
    r2 = x2_ref[...]                                            # bf16

    def weight_feat(r, k):
        # BN scale is pre-folded into wlw; epilogue is add + clip only.
        v = jnp.dot(r, wlw_ref[k], preferred_element_type=jnp.float32)
        return jnp.clip(v + wlsh_ref[k:k + 1, :], 0.0, 6.0)     # (P, 16) fp32

    wv0 = weight_feat(r0, 0)
    wv1 = weight_feat(r1, 1)
    wv2 = weight_feat(r2, 2)

    # weight_levels conv (48 -> 3) == sum of three 16 -> 3 matmuls.
    logits = (jnp.dot(wv0, wfw_ref[0], preferred_element_type=jnp.float32)
              + jnp.dot(wv1, wfw_ref[1], preferred_element_type=jnp.float32)
              + jnp.dot(wv2, wfw_ref[2], preferred_element_type=jnp.float32)
              + wfb_ref[...])                                   # (P, 3)

    # Softmax over the 3 level logits: one exp over (P, 3), approx reciprocal.
    l0 = logits[:, 0:1]
    l1 = logits[:, 1:2]
    l2 = logits[:, 2:3]
    m = jnp.maximum(jnp.maximum(l0, l1), l2)
    p = jnp.exp(logits - m)
    p0 = p[:, 0:1]
    p1 = p[:, 1:2]
    p2 = p[:, 2:3]
    inv = pl.reciprocal(p0 + p1 + p2, approx=True)

    # SE gate (per-image, broadcast over the tile) + per-level softmax weight.
    # Lane-aligned 128-wide bf16 output slices (no concat).
    o_ref[:, 0:C] = (r0 * (y0_ref[0] * (p0 * inv))).astype(o_ref.dtype)
    o_ref[:, C:2 * C] = (r1 * (y1_ref[0] * (p1 * inv))).astype(o_ref.dtype)
    o_ref[:, 2 * C:3 * C] = (r2 * (y2_ref[0] * (p2 * inv))).astype(o_ref.dtype)


def _pick_th0(B, H0, W0, row_cap):
    """Pick level-0 rows per grid step: th0 | H0, th0*W0 % 8 == 0 (sublane
    constraint), 16*th0*W0 <= row_cap, preferring a grid with >= 2 steps."""
    divs = [d for d in range(H0, 0, -1) if H0 % d == 0]
    ok = [d for d in divs if (d * W0) % 8 == 0]
    if not ok:
        # TODO(synk): pad the W axis for widths where no tile satisfies the
        #             (8,128) sublane constraint; typical even widths are fine.
        raise NotImplementedError("ASFF fused kernel requires th0*W0 % 8 == 0")
    fit = [d for d in ok if 16 * d * W0 <= row_cap] or [min(ok)]
    multi = [d for d in fit if B * (H0 // d) >= 2]   # keep both v7x TCs busy
    return max(multi) if multi else max(fit)


def asff_fused(c0, c1, x2f, y0, y1, y2, wlw, wlsh, wfw, wfb, *, B, H0, W0):
    C = x2f.shape[-1]
    W2 = 4 * W0
    M2 = x2f.shape[0]
    assert M2 == B * 16 * H0 * W0

    vmem_cap = _vmem_capacity_bytes()
    if vmem_cap >= 100 * 1024 * 1024:        # v5e / v6e (128 MiB physical)
        row_cap = 4096
    elif vmem_cap >= 48 * 1024 * 1024:       # v7x (64 MiB physical)
        row_cap = 2048
    else:
        row_cap = 1024
    vmem_limit = int(min(vmem_cap * 3 // 4, 96 * 1024 * 1024))

    th0 = _pick_th0(B, H0, W0, row_cap)
    Q0 = th0 * W0                  # level-0 pixels per step
    Q1 = 4 * th0 * W0              # level-1 pixels per step
    P = 16 * th0 * W0              # level-2 pixels per step
    spi = H0 // th0                # grid steps per image
    G = B * spi

    # bf16 selection matrices (0/1 values are exact in bf16); grid-invariant.
    e0 = jnp.asarray(_nearest_matrix(4 * th0, W2, 4), jnp.bfloat16)  # (P, Q0)
    e1 = jnp.asarray(_nearest_matrix(4 * th0, W2, 2), jnp.bfloat16)  # (P, Q1)

    zero2 = lambda g: (0, 0)
    zero3 = lambda g: (0, 0, 0)
    step2 = lambda g: (g, 0)
    yidx = lambda g, s=spi: (g // s, 0, 0)

    return pl.pallas_call(
        _asff_fused_kernel,
        out_shape=jax.ShapeDtypeStruct((M2, 3 * C), jnp.bfloat16),
        grid_spec=pltpu.PrefetchScalarGridSpec(
            num_scalar_prefetch=0,
            grid=(G,),
            in_specs=[
                pl.BlockSpec((P, Q0), zero2),      # e0 (resident, bf16)
                pl.BlockSpec((P, Q1), zero2),      # e1 (resident, bf16)
                pl.BlockSpec((Q0, C), step2),      # c0 tile (native res, bf16)
                pl.BlockSpec((Q1, C), step2),      # c1 tile (native res, bf16)
                pl.BlockSpec((P, C), step2),       # x2 tile (bf16)
                pl.BlockSpec((1, 1, C), yidx),     # SE gate level 0
                pl.BlockSpec((1, 1, C), yidx),     # SE gate level 1
                pl.BlockSpec((1, 1, C), yidx),     # SE gate level 2
                pl.BlockSpec((3, C, 16), zero3),   # weight_level convs (bf16, scale folded)
                pl.BlockSpec((3, 16), zero2),      # BN shifts
                pl.BlockSpec((3, 16, 3), zero3),   # weight_levels conv, split by level
                pl.BlockSpec((1, 3), zero2),       # weight_levels bias
            ],
            out_specs=pl.BlockSpec((P, 3 * C), step2),
        ),
        compiler_params=pltpu.CompilerParams(
            dimension_semantics=("parallel",),
            vmem_limit_bytes=vmem_limit),
    )(e0, e1, c0, c1, x2f, y0, y1, y2, wlw, wlsh, wfw, wfb)


# ---------------------------------------------------------------------------
# Parameter init (deterministic, synthetic) — ASFF(level=2, expansion=1)
# ---------------------------------------------------------------------------

def init_params(key, expansion=1):
    dim = [512 * expansion, 256 * expansion, 128 * expansion]
    inter = dim[2]          # level == 2
    compress_c = 16
    se_hidden = inter // 16

    keys = iter(jax.random.split(key, 48))   # 33 keys needed

    def conv_w(cin, cout, s=0.05):
        return s * jax.random.normal(next(keys), (cin, cout), jnp.float32)

    def bn(c):
        gamma = 1.0 + 0.1 * jax.random.normal(next(keys), (c,), jnp.float32)
        beta = 0.1 * jax.random.normal(next(keys), (c,), jnp.float32)
        mean = 0.1 * jax.random.normal(next(keys), (c,), jnp.float32)
        var = jnp.abs(jax.random.normal(next(keys), (c,), jnp.float32)) + 0.5
        scale = gamma / jnp.sqrt(var + 1e-5)
        shift = beta - mean * scale
        return scale, shift

    p = {"inter_dim": inter}
    p["cl0_w"] = conv_w(dim[0], inter)
    p["cl0_scale"], p["cl0_shift"] = bn(inter)
    p["cl1_w"] = conv_w(dim[1], inter)
    p["cl1_scale"], p["cl1_shift"] = bn(inter)
    for name in ("wl0", "wl1", "wl2"):
        p[f"{name}_w"] = conv_w(inter, compress_c)
        p[f"{name}_scale"], p[f"{name}_shift"] = bn(compress_c)
    p["wl_final_w"] = conv_w(3 * compress_c, 3, s=0.2)
    p["wl_final_b"] = 0.1 * jax.random.normal(next(keys), (3,), jnp.float32)
    for name in ("se0", "se1", "se2"):
        p[f"{name}_w1"] = conv_w(inter, se_hidden, s=0.2)
        p[f"{name}_w2"] = conv_w(se_hidden, inter, s=0.2)
    return p


# ---------------------------------------------------------------------------
# ASFF forward (level == 2 branch), Pallas-backed
# ---------------------------------------------------------------------------

def asff_level2_forward(params, x0, x1, x2):
    """x0: (B,H0,W0,512e), x1: (B,2H0,2W0,256e), x2: (B,4H0,4W0,128e)
       -> (B,4H0,4W0,384e) bf16."""
    B, H0, W0, C0 = x0.shape
    _, H1, W1, C1 = x1.shape
    _, H2, W2, C = x2.shape
    assert C == params["inter_dim"]
    assert H1 == 2 * H0 and W1 == 2 * W0 and H2 == 4 * H0 and W2 == 4 * W0

    bf16 = jnp.bfloat16

    # Fold BN scale into the 1x1 conv weights (epilogue becomes add + clip).
    cl0_wf = (params["cl0_w"] * params["cl0_scale"][None, :]).astype(bf16)
    cl1_wf = (params["cl1_w"] * params["cl1_scale"][None, :]).astype(bf16)

    # 1) compress convs at NATIVE resolution, bf16 in / bf16 out, with the SE
    #    pooling partial sums produced by the same kernel (no extra HBM pass).
    c0, sum0 = conv1x1_bn_relu6(x0.astype(bf16).reshape(B, H0 * W0, C0),
                                cl0_wf, params["cl0_shift"])
    c1, sum1 = conv1x1_bn_relu6(x1.astype(bf16).reshape(B, H1 * W1, C1),
                                cl1_wf, params["cl1_shift"])

    # 2) SE gates.  mean(nearest_upsample(x)) == mean(x), so the native-res
    #    sums are exactly the pooled values; tiny excitation stays in XLA.
    x2_bf = x2.astype(bf16)
    pooled0 = sum0[:, 0, :] / float(H0 * W0)
    pooled1 = sum1[:, 0, :] / float(H1 * W1)
    pooled2 = jnp.mean(x2_bf.reshape(B, H2 * W2, C), axis=1, dtype=jnp.float32)

    def se(pooled, w1, w2):
        return jax.nn.sigmoid(jnp.maximum(pooled @ w1, 0.0) @ w2)

    y0 = se(pooled0, params["se0_w1"], params["se0_w2"]).reshape(B, 1, C)
    y1 = se(pooled1, params["se1_w1"], params["se1_w2"]).reshape(B, 1, C)
    y2 = se(pooled2, params["se2_w1"], params["se2_w2"]).reshape(B, 1, C)

    # 3) fused upsample + weight-level convs + softmax + gating + concat.
    wlw = jnp.stack([params[f"wl{k}_w"] * params[f"wl{k}_scale"][None, :]
                     for k in range(3)]).astype(bf16)           # (3, C, 16)
    wlsh = jnp.stack([params[f"wl{k}_shift"] for k in range(3)])  # (3, 16)
    wfw = params["wl_final_w"].reshape(3, 16, 3)    # split 48->3 conv by level
    wfb = params["wl_final_b"].reshape(1, 3)

    out_flat = asff_fused(c0.reshape(B * H0 * W0, C),
                          c1.reshape(B * H1 * W1, C),
                          x2_bf.reshape(B * H2 * W2, C),
                          y0, y1, y2, wlw, wlsh, wfw, wfb,
                          B=B, H0=H0, W0=W0)
    return out_flat.reshape(B, H2, W2, 3 * C)


# ---------------------------------------------------------------------------
# Pure-JAX fp32 reference (same layout / same math) for a sanity check
# ---------------------------------------------------------------------------

def asff_level2_reference(params, x0, x1, x2):
    hp = jax.lax.Precision.HIGHEST

    def conv(x2d, w, scale, shift, act="relu6"):
        y = jnp.dot(x2d, w, precision=hp) * scale + shift
        return jnp.clip(y, 0.0, 6.0) if act == "relu6" else y

    B, H0, W0, C0 = x0.shape
    _, H1, W1, C1 = x1.shape
    _, H2, W2, C = x2.shape
    c0 = conv(x0.reshape(-1, C0), params["cl0_w"], params["cl0_scale"], params["cl0_shift"])
    l0 = jnp.repeat(jnp.repeat(c0.reshape(B, H0, W0, C), 4, axis=1), 4, axis=2)
    c1 = conv(x1.reshape(-1, C1), params["cl1_w"], params["cl1_scale"], params["cl1_shift"])
    l1 = jnp.repeat(jnp.repeat(c1.reshape(B, H1, W1, C), 2, axis=1), 2, axis=2)
    l2 = x2
    M = B * H2 * W2
    r0, r1, r2 = l0.reshape(M, C), l1.reshape(M, C), l2.reshape(M, C)
    wcat = jnp.concatenate(
        [conv(r0, params["wl0_w"], params["wl0_scale"], params["wl0_shift"]),
         conv(r1, params["wl1_w"], params["wl1_scale"], params["wl1_shift"]),
         conv(r2, params["wl2_w"], params["wl2_scale"], params["wl2_shift"])], axis=-1)
    wlog = conv(wcat, params["wl_final_w"], jnp.ones((3,)), params["wl_final_b"], act="none")
    w = jax.nn.softmax(wlog, axis=-1).reshape(B, H2 * W2, 3)

    def se_ref(r3d, w1, w2):
        pooled = jnp.mean(r3d, axis=1)
        h = jnp.maximum(jnp.dot(pooled, w1, precision=hp), 0.0)
        return jax.nn.sigmoid(jnp.dot(h, w2, precision=hp))

    r0_3d, r1_3d, r2_3d = (r.reshape(B, H2 * W2, C) for r in (r0, r1, r2))
    y0 = se_ref(r0_3d, params["se0_w1"], params["se0_w2"])[:, None, :]
    y1 = se_ref(r1_3d, params["se1_w1"], params["se1_w2"])[:, None, :]
    y2 = se_ref(r2_3d, params["se2_w1"], params["se2_w2"])[:, None, :]
    out = jnp.concatenate([r0_3d * y0 * w[..., 0:1],
                           r1_3d * y1 * w[..., 1:2],
                           r2_3d * y2 * w[..., 2:3]], axis=-1)
    return out.reshape(B, H2, W2, 3 * C)


# ---------------------------------------------------------------------------

if __name__ == "__main__":
    key = jax.random.PRNGKey(0)
    kp, k0, k1, k2 = jax.random.split(key, 4)

    params = init_params(kp, expansion=1)

    B, H0 = 2, 4   # level-0 spatial 4x4, level-1 8x8, level-2 16x16
    x_level_0 = jax.random.normal(k0, (B, H0, H0, 512), jnp.float32)        # NHWC
    x_level_1 = jax.random.normal(k1, (B, 2 * H0, 2 * H0, 256), jnp.float32)
    x_level_2 = jax.random.normal(k2, (B, 4 * H0, 4 * H0, 128), jnp.float32)

    out = jax.block_until_ready(
        asff_level2_forward(params, x_level_0, x_level_1, x_level_2))
    ref = jax.block_until_ready(
        asff_level2_reference(params, x_level_0, x_level_1, x_level_2))

    assert out.shape == (B, 4 * H0, 4 * H0, 384), out.shape
    # bf16 end-to-end path vs fp32 HIGHEST-precision reference.
    np.testing.assert_allclose(np.asarray(out.astype(jnp.float32)),
                               np.asarray(ref), rtol=6e-2, atol=6e-2)

    print("KERNEL_OK")
</pallas_src>

<mosaic_0001>
module attributes {stable_mosaic.version = 11 : i64} {
  func.func @_conv1x1_kernel(%arg0: i32, %arg1: i32, %arg2: memref<1x16x512xbf16, #tpu.memory_space<vmem>>, %arg3: memref<512x128xbf16, #tpu.memory_space<vmem>>, %arg4: memref<1x128xf32, #tpu.memory_space<vmem>>, %arg5: memref<1x16x128xbf16, #tpu.memory_space<vmem>>, %arg6: memref<1x1x128xf32, #tpu.memory_space<vmem>>) attributes {dimension_semantics = [#tpu.dimension_semantics<parallel>, #tpu.dimension_semantics<arbitrary>], iteration_bounds = array<i64: 2, 1>, scalar_prefetch = 0 : i64, scratch_operands = 0 : i64, tpu.core_type = #tpu.core_type<tc>, window_params = [{transform_indices = @transform_0, window_bounds = array<i64: 1, 16, 512>}, {pipeline_mode = #tpu.pipeline_mode<synchronous>, transform_indices = @transform_1, window_bounds = array<i64: 512, 128>}, {pipeline_mode = #tpu.pipeline_mode<synchronous>, transform_indices = @transform_2, window_bounds = array<i64: 1, 128>}, {transform_indices = @transform_3, window_bounds = array<i64: 1, 16, 128>}, {transform_indices = @transform_4, window_bounds = array<i64: 1, 1, 128>}]} {
    %c0 = arith.constant 0 : index
    %c0_0 = arith.constant 0 : index
    %c0_1 = arith.constant 0 : index
    %0 = vector.load %arg2[%c0, %c0_0, %c0_1] : memref<1x16x512xbf16, #tpu.memory_space<vmem>>, vector<1x16x512xbf16>
    %1 = vector.shape_cast %0 : vector<1x16x512xbf16> to vector<16x512xbf16>
    %c0_2 = arith.constant 0 : index
    %c0_3 = arith.constant 0 : index
    %2 = vector.load %arg3[%c0_2, %c0_3] : memref<512x128xbf16, #tpu.memory_space<vmem>>, vector<512x128xbf16>
    %cst = arith.constant dense<0.000000e+00> : vector<16x128xf32>
    %3 = tpu.matmul %1, %2, %cst {dimension_numbers = #tpu.dot_dimension_numbers<[1], [0], [0], [1], [0, 0, 1, 1], [], []>} : vector<16x512xbf16>, vector<512x128xbf16>, vector<16x128xf32> -> vector<16x128xf32>
    %c0_4 = arith.constant 0 : index
    %c0_5 = arith.constant 0 : index
    %4 = vector.load %arg4[%c0_4, %c0_5] : memref<1x128xf32, #tpu.memory_space<vmem>>, vector<1x128xf32>
    %5 = vector.broadcast %4 : vector<1x128xf32> to vector<16x128xf32>
    %6 = arith.addf %3, %5 : vector<16x128xf32>
    %cst_6 = arith.constant 0.000000e+00 : f32
    %cst_7 = arith.constant 6.000000e+00 : f32
    %7 = vector.broadcast %cst_6 : f32 to vector<16x128xf32>
    %8 = arith.maximumf %7, %6 : vector<16x128xf32>
    %9 = vector.broadcast %cst_7 : f32 to vector<16x128xf32>
    %10 = arith.minimumf %9, %8 : vector<16x128xf32>
    %11 = arith.truncf %10 : vector<16x128xf32> to vector<16x128xbf16>
    %c0_8 = arith.constant 0 : index
    %c0_9 = arith.constant 0 : index
    %c0_10 = arith.constant 0 : index
    %12 = vector.load %arg5[%c0_8, %c0_9, %c0_10] : memref<1x16x128xbf16, #tpu.memory_space<vmem>>, vector<1x16x128xbf16>
    %13 = vector.shape_cast %12 : vector<1x16x128xbf16> to vector<16x128xbf16>
    %14 = vector.shape_cast %11 : vector<16x128xbf16> to vector<1x16x128xbf16>
    tpu.vector_store %arg5[%c0_8, %c0_9, %c0_10], %14 {strides = array<i32>} : memref<1x16x128xbf16, #tpu.memory_space<vmem>>, vector<1x16x128xbf16>,
    %c0_i32 = arith.constant 0 : i32
    %15 = arith.cmpi eq, %arg1, %c0_i32 : i32
    %16 = arith.extui %15 : i1 to i32
    %c0_i32_11 = arith.constant 0 : i32
    %17 = arith.cmpi ne, %16, %c0_i32_11 : i32
    scf.if %17 {
      %cst_21 = arith.constant 0.000000e+00 : f32
      %35 = vector.broadcast %cst_21 : f32 to vector<1x1x128xf32>
      %c0_22 = arith.constant 0 : index
      %c0_23 = arith.constant 0 : index
      %c0_24 = arith.constant 0 : index
      %36 = vector.load %arg6[%c0_22, %c0_23, %c0_24] : memref<1x1x128xf32, #tpu.memory_space<vmem>>, vector<1x1x128xf32>
      tpu.vector_store %arg6[%c0_22, %c0_23, %c0_24], %35 {strides = array<i32>} : memref<1x1x128xf32, #tpu.memory_space<vmem>>, vector<1x1x128xf32>,
    } else {
    }
    %c16_i32 = arith.constant 16 : i32
    %18 = arith.muli %arg1, %c16_i32 : i32
    %c16_i32_12 = arith.constant 16 : i32
    %19 = arith.subi %c16_i32_12, %18 : i32
    %20 = tpu.iota {dimensions = array<i32: 0>} : vector<16x1xi32>
    %21 = vector.broadcast %19 : i32 to vector<16x1xi32>
    %22 = arith.cmpi slt, %20, %21 : vector<16x1xi32>
    %cst_13 = arith.constant 0.000000e+00 : f32
    %23 = vector.shape_cast %22 : vector<16x1xi1> to vector<16x1xi1>
    %24 = vector.broadcast %23 : vector<16x1xi1> to vector<16x128xi1>
    %25 = vector.broadcast %cst_13 : f32 to vector<16x128xf32>
    %26 = arith.select %24, %10, %25 : vector<16x128xi1>, vector<16x128xf32>
    %cst_14 = arith.constant dense<0.000000e+00> : vector<128xf32>
    %27 = vector.multi_reduction <add>, %26, %cst_14 [0] : vector<16x128xf32> to vector<128xf32>
    %28 = vector.shape_cast %27 : vector<128xf32> to vector<1x128xf32>
    %c0_15 = arith.constant 0 : index
    %c0_16 = arith.constant 0 : index
    %c0_17 = arith.constant 0 : index
    %29 = vector.load %arg6[%c0_15, %c0_16, %c0_17] : memref<1x1x128xf32, #tpu.memory_space<vmem>>, vector<1x1x128xf32>
    %30 = vector.shape_cast %29 : vector<1x1x128xf32> to vector<1x128xf32>
    %31 = arith.addf %30, %28 : vector<1x128xf32>
    %c0_18 = arith.constant 0 : index
    %c0_19 = arith.constant 0 : index
    %c0_20 = arith.constant 0 : index
    %32 = vector.load %arg6[%c0_18, %c0_19, %c0_20] : memref<1x1x128xf32, #tpu.memory_space<vmem>>, vector<1x1x128xf32>
    %33 = vector.shape_cast %32 : vector<1x1x128xf32> to vector<1x128xf32>
    %34 = vector.shape_cast %31 : vector<1x128xf32> to vector<1x1x128xf32>
    tpu.vector_store %arg6[%c0_18, %c0_19, %c0_20], %34 {strides = array<i32>} : memref<1x1x128xf32, #tpu.memory_space<vmem>>, vector<1x1x128xf32>,
    return
  }
  func.func @transform_0(%arg0: i32, %arg1: i32) -> (i32, i32, i32) {
    %c0_i32 = arith.constant 0 : i32
    %c0_i32_0 = arith.constant 0 : i32
    return %arg0, %arg1, %c0_i32 : i32, i32, i32
  }
  func.func @transform_1(%arg0: i32, %arg1: i32) -> (i32, i32) {
    %c0_i32 = arith.constant 0 : i32
    %c0_i32_0 = arith.constant 0 : i32
    %c0_i32_1 = arith.constant 0 : i32
    return %c0_i32, %c0_i32_0 : i32, i32
  }
  func.func @transform_2(%arg0: i32, %arg1: i32) -> (i32, i32) {
    %c0_i32 = arith.constant 0 : i32
    %c0_i32_0 = arith.constant 0 : i32
    %c0_i32_1 = arith.constant 0 : i32
    return %c0_i32, %c0_i32_0 : i32, i32
  }
  func.func @transform_3(%arg0: i32, %arg1: i32) -> (i32, i32, i32) {
    %c0_i32 = arith.constant 0 : i32
    %c0_i32_0 = arith.constant 0 : i32
    return %arg0, %arg1, %c0_i32 : i32, i32, i32
  }
  func.func @transform_4(%arg0: i32, %arg1: i32) -> (i32, i32, i32) {
    %c0_i32 = arith.constant 0 : i32
    %c0_i32_0 = arith.constant 0 : i32
    %c0_i32_1 = arith.constant 0 : i32
    return %arg0, %c0_i32, %c0_i32_0 : i32, i32, i32
  }
}

</mosaic_0001>

<bundles_post_ra>
// kernel: tpu_custom_call.1
= control target key start
LH: loop header
LB: loop body
LE: loop exit
PB: predicated region body
PF: predicated region fallthrough
CT: control target
= control target key end

     0   :  { %10 = vsyncpa [#allocation3], 0  ;;  %s1546_s0 = inlined_call_operand.hbm [shape: bf16[2,16,512], index: 0, kind: input, shape index: {}]   ;;  %s1547_s1 = inlined_call_operand.hbm [shape: bf16[512,128], index: 1, kind: input, shape index: {}]   ;;  %s1548_s2 = inlined_call_operand.vmem [shape: f32[1,128], index: 2, kind: input, shape index: {}]   ;;  %s1549_s3 = inlined_call_operand.hbm [shape: bf16[2,16,128], index: 3, kind: output, shape index: {0}]   ;;  %s1550_s4 = inlined_call_operand.hbm [shape: f32[2,1,128], index: 4, kind: output, shape index: {1}]  }
   0x1   :  { %12 = vsyncpa [#allocation3 + $0x1], 0 }
   0x2   :  { %13 = vsyncpa [#allocation6], 0 }
   0x3   :  { %14 = vsyncpa [#allocation4], 0 }
   0x4   :  { %16 = vsyncpa [#allocation4 + $0x1], 0 }
   0x5   :  { %17 = vsyncpa [#allocation9], 0 }
   0x6   :  { %19 = vsyncpa [#allocation9 + $0x1], 0  ;;  %s1280_s15 = smov 0   ;;  %s1282_s16 = smov 0  }
   0x7   :  { %s1284_s17 = smov 0   ;;  %s1286_s18 = smov 0  }
   0x8   :  { %s1288_s19 = smov 0   ;;  %s1290_s20 = smov 0  }
   0x9 LB: > { %s833_s21 = sadd.s32 4294967295, %s1242_s20   ;;  %s834_s22 = sadd.s32 4294967294, %s1242_s20   ;;  %s1242_s20 = sphi %s1290_s20, %s25_s20   ;;  %s1238_s19 = sphi %s1288_s19, %s1574_s19   ;;  %s1234_s18 = sphi %s1286_s18, %s1573_s18   ;;  %s1230_s17 = sphi %s1284_s17, %s1572_s17   ;;  %s1226_s16 = sphi %s1282_s16, %s1571_s16   ;;  %s1222_s15 = sphi %s1280_s15, %s1570_s15  }
   0xa   : > { %p59_p0 = scmp.ne.s32.totalorder %s1226_s16, %s1222_s15  ;;  %p1314_p1 = scmp.eq.s32.totalorder %s833_s21, 0 }
   0xb   : > { %p1318_p2 = scmp.eq.s32.totalorder %s833_s21, 1  ;;  %p133_p3 = scmp.eq.s32.totalorder %s834_s22, 1 }
   0xc   : > { %s1555_s23 = scalar_select %p1314_p1, 1, 0 }
   0xd   : > { %s1556_s24 = scalar_select %p1318_p2, 1, 0 }
   0xe   : > { %p1324_p4 = por %p1314_p1, %p59_p0  ;;  %p835_p5 = scmp.ge.s32.totalorder %s1242_s20, 1 }
   0xf   : > { %p1329_p6 = por %p133_p3, %p59_p0  ;;  %p166_p7 = scmp.lt.s32.totalorder %s1242_s20, 3 }
  0x10   : > { %s1557_s25 = scalar_select %p1324_p4, 1, 0 }
  0x11   : > { %s1558_s26 = scalar_select %p1329_p6, 1, 0 }
  0x12   : > { %p1334_p8 = pnand %p835_p5, %p166_p7  ;;  %s1244_s28 = smov [#allocation5]  }
  0x13   : > { %s178_s29 = sshll.u32 %s1244_s28, 4  ;;  %s37_s5 = sadd.s32 1, %s1238_s19  ;;  %s179_s29 = int_to_ptr.vmem [resolvable:$true] %s178_s29 }
  0x14   : > { %s1559_s27 = scalar_select %p1334_p8, 1, 0 }
  0x15   : > { %p953_p9 = pneg %p1334_p8  ;;  %s1066_s8 = scalar_lea.hbm %s1547_s1, 4096 }
  0x16   : > { %p1067_p12 = scmp.ne.s32.totalorder %s1547_s1, %s1066_s8  ;;  %p1073_p5 = scmp.lt.u32.totalorder %s1066_s8, %s1547_s1 }
  0x17   : > { %p1343_p11 = pnand %p953_p9, %p1314_p1 }
  0x19   : > { %p1068_p13 = pneg %p1343_p11 }
  0x1b   : > { %p1069_p0 = pnand %p1068_p13, %p1067_p12 }
  0x1d   : > { %p1070_p3 = pneg %p1069_p0 }
  0x1f   : > { %p1075_p7 = pnand %p1073_p5, %p1070_p3 }
  0x21   : > { %1078 = shalt.err (!%p1075_p7)
}
  0x22   : > { %s1079_s13 = scalar_lea.vmem %s179_s29, 4096  ;;  %p1087_p1 = scmp.lt.s32.totalorder %s179_s29, %s179_s29 }
  0x23   : > { %p1080_p9 = scmp.ne.s32.totalorder %s179_s29, %s1079_s13  ;;  %p1088_p4 = scmp.lt.s32.totalorder %s1079_s13, %s1079_s13 }
  0x25   : > { %p1082_p10 = pnand %p1080_p9, %p1068_p13  ;;  %p1089_p8 = por %p1088_p4, %p1087_p1 }
  0x27   : > { %p1083_p6 = pneg %p1082_p10 }
  0x29   : > { %p1090_p2 = pnand %p1089_p8, %p1083_p6 }
  0x2b   : > { %1093 = shalt.err (!%p1090_p2)
}
  0x2c   : > { %s1245_s14 = smov 64   ;;  %s1246_s21 = smov 4  }
  0x2d   : > { %956 = dma.hbm_to_vmem [thread:$0]  (!%p1343_p11), %s1547_s1, 4096, %s179_s29, [#allocation6], %s1245_s14, %s1245_s14, %s1246_s21  }
  0x2e   : > { %p39_p1 = scmp.ge.s32.totalorder %s37_s5, 2  ;;  %s46_s6 = sadd.s32 1, %s1230_s17 }
  0x2f   : > { %p53_p2 = scmp.ne.s32.totalorder %s1230_s17, %s1226_s16  ;;  %p54_p4 = scmp.eq.s32.totalorder %s1242_s20, 0 }
  0x30   : > { %s1576_s5 = smov (%p39_p1, %s37_s5), 0  ;;  %p1562_p8 = scmp.ne.s32.totalorder %s1556_s24, 0 }
  0x31   : > { %p1370_p6 = por %p54_p4, %p53_p2  ;;  %s41_s30 = ssub.s32 %s1238_s19, %s1576_s5 }
  0x32   : > { %p1376_p10 = por %p1562_p8, %p53_p2  ;;  %p969_p12 = scmp.lt.s32.totalorder %s1242_s20, 2 }
  0x33   : > { %p44_p11 = scmp.eq.s32.totalorder %s41_s30, 0  ;;  %s195_s29 = sand.u32 1, %s1230_s17  }
  0x34   : > { %s838_s9 = sshll.u32 %s195_s29, 5  ;;  %s890_s11 = sshll.u32 %s1238_s19, 9 }
  0x35   : > { %s1385_s10 = scalar_select %p44_p11, %s1230_s17, %s46_s6  }
  0x36   : > { %s1391_s14 = scalar_lea.hbm %s1546_s0, %s890_s11  ;;  %s199_s24 = scalar_lea.vmem [#allocation2], %s838_s9 }
  0x37   : > { %s209_s21 = sshll.u32 %s199_s24, 4  ;;  %p1397_p13 = pnand %p969_p12, %p1370_p6  ;;  %s1393_s21 = int_to_ptr.vmem [resolvable:$true] %s209_s21 }
  0x38   : > { %s1401_s28 = scalar_lea.sflag [#allocation3], %s195_s29  ;;  %s1094_s6 = scalar_lea.hbm %s1391_s14, 512 }
  0x39   : > { %p1095_p0 = scmp.ne.s32.totalorder %s1391_s14, %s1094_s6  ;;  %p1096_p3 = pneg %p1397_p13 }
  0x3a   : > { %s1099_s7 = scalar_lea.hbm %s1546_s0, 1024  ;;  %p1100_p9 = scmp.lt.u32.totalorder %s1391_s14, %s1546_s0 }
  0x3b   : > { %p1097_p5 = pnand %p1096_p3, %p1095_p0  ;;  %p1101_p1 = scmp.lt.u32.totalorder %s1099_s7, %s1094_s6 }
  0x3c   : > { %p1103_p4 = scmp.lt.u32.totalorder %s1094_s6, %s1391_s14 }
  0x3d   : > { %p1098_p7 = pneg %p1097_p5  ;;  %p1102_p2 = por %p1101_p1, %p1100_p9 }
  0x3f   : > { %p1104_p6 = por %p1103_p4, %p1102_p2 }
  0x41   : > { %p1105_p8 = pnand %p1104_p6, %p1098_p7 }
  0x43   : > { %1108 = shalt.err (!%p1105_p8)
}
  0x44   : > { %s1109_s29 = scalar_lea.vmem %s1393_s21, 512  ;;  %s1247_s13 = smov [#allocation2]  }
  0x45   : > { %p1110_p12 = scmp.ne.s32.totalorder %s1393_s21, %s1109_s29  ;;  %s1114_s24 = sshll.u32 %s1247_s13, 4  ;;  %s1115_s24 = int_to_ptr.vmem [resolvable:$false] %s1114_s24 }
  0x46   : > { %s1116_s30 = scalar_lea.vmem %s1115_s24, 1024  ;;  %p1117_p5 = scmp.lt.s32.totalorder %s1393_s21, %s1115_s24 }
  0x47   : > { %p1112_p11 = pnand %p1110_p12, %p1096_p3  ;;  %p1118_p9 = scmp.lt.s32.totalorder %s1116_s30, %s1109_s29 }
  0x49   : > { %p1113_p0 = pneg %p1112_p11  ;;  %p1119_p1 = por %p1118_p9, %p1117_p5 }
  0x4b   : > { %p1120_p2 = pnand %p1119_p1, %p1113_p0 }
  0x4d   : > { %1123 = shalt.err (!%p1120_p2)
}
  0x4e   : > { %s1248_s6 = smov 256   ;;  %s1249_s9 = smov 16  }
  0x4f   : > { %960 = dma.hbm_to_vmem [thread:$0]  (!%p1397_p13), %s1391_s14, 512, %s1393_s21, %s1401_s28, %s1248_s6, %s1248_s6, %s1249_s9  }
  0x50   : > { %p1565_p3 = scmp.ne.s32.totalorder %s1559_s27, 0 }
  0x51   : > { %s1432_s7 = sand.u32 (!%p1565_p3), 1, %s1226_s16   ;;  %p1566_p7 = scmp.ne.s32.totalorder (!%p1565_p3), %s1557_s25, 0 }
  0x52   : > { %221 = sbr.rel (%p1565_p3) target bundleno = 393 (0x189), region = 32  ;;  %s842_s11 = sshll.u32 (!%p1565_p3), %s1432_s7, 5 }
  0x53   : > { %s224_s12 = scalar_lea.sflag (!%p1565_p3), [#allocation3], %s1432_s7  ;;  %s1436_s29 = scalar_lea.vmem (!%p1565_p3), [#allocation2], %s842_s11 }
  0x59   : > { %1205 = dma.done.wait (%p1566_p7), %s224_s12, 512  }
  0x5a   : > { %1207 = vsyncadd (%p1566_p7), %s224_s12, 4294966784  ;;  %p1567_p13 = scmp.ne.s32.totalorder %s1555_s23, 0 }
  0x5c   : > { %1209 = dma.done.wait (%p1567_p13), [#allocation6], 4096  }
  0x5d   : > { %1211 = vsyncadd (%p1567_p13), [#allocation6], 4294963200  ;;  %v1028_v0 = vld [vmem:[#allocation5 + $0x40] sm:$0xff]   ;;  %v1032_v4 = vld [vmem:[#allocation5 + $0x48] sm:$0xff]   ;;  %s1451_s23 = scalar_lea.vmem [#allocation8], %s1432_s7  ;;  %v1250_v36 = vmov 0.0  }
  0x5e   : > { %v1029_v1 = vld [vmem:[#allocation5 + $0xc0] sm:$0xff]   ;;  %899 = vmatprep.subr.bf16.mxu0 %v1028_v0  ;;  %v1033_v5 = vld [vmem:[#allocation5 + $0xc8] sm:$0xff]   ;;  %v1036_v8 = vld [vmem:[#allocation5 + $0x50] sm:$0xff]   ;;  %650 = vst [vmem:[%s1451_s23] sm:$0x1] %v1250_v36  ;;  %s844_s14 = sshll.u32 %s1432_s7, 3  ;;  %s893_s21 = sshll.u32 %s1234_s18, 7 }
  0x5f   : > { %v1030_v2 = vld [vmem:[#allocation5] sm:$0xff]   ;;  %921 = vmatprep.subr.bf16.mxu1 %v1029_v1  ;;  %v1034_v6 = vld [vmem:[#allocation5 + $0x8] sm:$0xff]   ;;  %v1037_v9 = vld [vmem:[#allocation5 + $0xd0] sm:$0xff]   ;;  %s253_s22 = scalar_lea.vmem [#allocation7], %s844_s14  ;;  %s1462_s30 = scalar_lea.hbm %s1549_s3, %s893_s21 }
  0x60   : > { %v1031_v3 = vld [vmem:[#allocation5 + $0x80] sm:$0xff]   ;;  %900 = vmatpush3.bf16.msra.mxu0 %v1030_v2  ;;  %v1035_v7 = vld [vmem:[#allocation5 + $0x88] sm:$0xff]   ;;  %v1038_v10 = vld [vmem:[#allocation5 + $0x10] sm:$0xff]   ;;  %s695_s28 = sshll.u32 %s253_s22, 4  ;;  %s676_s6 = scalar_lea.sflag [#allocation4], %s1432_s7  ;;  %s1464_s28 = int_to_ptr.vmem [resolvable:$true] %s695_s28 }
  0x61   : > { %922 = vmatpush3.bf16.msra.mxu1 %v1031_v3  ;;  %901 = vmatprep.subr.bf16.mxu0 %v1032_v4  ;;  %v1039_v11 = vld [vmem:[#allocation5 + $0x90] sm:$0xff]   ;;  %v1040_v12 = vld [vmem:[#allocation5 + $0x58] sm:$0xff]   ;;  %v1044_v16 = vld [vmem:[#allocation5 + $0x60] sm:$0xff]   ;;  %s1124_s9 = scalar_lea.vmem %s1464_s28, 128  ;;  %s1251_s11 = smov [#allocation7]  }
  0x62   : > { %923 = vmatprep.subr.bf16.mxu1 %v1033_v5  ;;  %v1041_v13 = vld [vmem:[#allocation5 + $0xd8] sm:$0xff]   ;;  %v1045_v17 = vld [vmem:[#allocation5 + $0xe0] sm:$0xff]   ;;  %v1048_v20 = vld [vmem:[#allocation5 + $0x68] sm:$0xff]   ;;  %p1125_p4 = scmp.ne.s32.totalorder %s1464_s28, %s1124_s9  ;;  %s1128_s12 = sshll.u32 %s1251_s11, 4  ;;  %s1129_s12 = int_to_ptr.vmem [resolvable:$false] %s1128_s12 }
  0x63   : > { %v1042_v14 = vld [vmem:[#allocation5 + $0x18] sm:$0xff]   ;;  %v1046_v18 = vld [vmem:[#allocation5 + $0x20] sm:$0xff]   ;;  %v1049_v21 = vld [vmem:[#allocation5 + $0xe8] sm:$0xff]   ;;  %p1131_p12 = scmp.lt.s32.totalorder %s1464_s28, %s1129_s12 }
  0x64   : > { %902 = vmatpush3.bf16.msra.mxu0 %v1034_v6  ;;  %v1043_v15 = vld [vmem:[#allocation5 + $0x98] sm:$0xff]   ;;  %v1047_v19 = vld [vmem:[#allocation5 + $0xa0] sm:$0xff]   ;;  %v1050_v22 = vld [vmem:[#allocation5 + $0x28] sm:$0xff]   ;;  %p1126_p6 = pnand %p1125_p4, %p1376_p10 }
  0x65   : > { %924 = vmatpush3.bf16.msra.mxu1 %v1035_v7  ;;  %903 = vmatprep.subr.bf16.mxu0 %v1036_v8  ;;  %v1051_v23 = vld [vmem:[#allocation5 + $0xa8] sm:$0xff]   ;;  %v1052_v24 = vld [vmem:[#allocation5 + $0x70] sm:$0xff]   ;;  %v1056_v28 = vld [vmem:[#allocation5 + $0x78] sm:$0xff]  }
  0x66   : > { %925 = vmatprep.subr.bf16.mxu1 %v1037_v9  ;;  %v1053_v25 = vld [vmem:[#allocation5 + $0xf0] sm:$0xff]   ;;  %v1057_v29 = vld [vmem:[#allocation5 + $0xf8] sm:$0xff]   ;;  %v845_v39 = vld [vmem:[%s1548_s2] ss:$0 sm:$0xff]  ;;  %p1127_p8 = pneg %p1126_p6 }
  0x67   : > { %v1054_v26 = vld [vmem:[#allocation5 + $0x30] sm:$0xff]   ;;  %v1058_v30 = vld [vmem:[#allocation5 + $0x38] sm:$0xff]  }
  0x68   : > { %904 = vmatpush3.bf16.msra.mxu0 %v1038_v10  ;;  %v1055_v27 = vld [vmem:[#allocation5 + $0xb0] sm:$0xff]   ;;  %v1059_v31 = vld [vmem:[#allocation5 + $0xb8] sm:$0xff]  }
  0x69   : > { %926 = vmatpush3.bf16.msra.mxu1 %v1039_v11  ;;  %905 = vmatprep.subr.bf16.mxu0 %v1040_v12  ;;  %v1060_v32 = vld [vmem:[%s1436_s29] ss:$16 sps:$4 sm:$0xff]   ;;  %v1062_v33 = vld [vmem:[%s1436_s29 + $0x4] ss:$16 sps:$4 sm:$0xff]   ;;  %v1063_v34 = vld [vmem:[%s1436_s29 + $0x8] ss:$16 sps:$4 sm:$0xff]  }
  0x6a   : > { %927 = vmatprep.subr.bf16.mxu1 %v1041_v13  ;;  %v1065_v35 = vld [vmem:[%s1436_s29 + $0xc] ss:$16 sps:$4 sm:$0xff]   ;;  %582 = vmatprep.mubr.bf16.mxu0 %v1062_v33  ;;  %s1130_s29 = scalar_lea.vmem %s1129_s12, 256 }
  0x6b   : > { %623 = vmatprep.mubr.bf16.mxu1 %v1065_v35  ;;  %p1132_p11 = scmp.lt.s32.totalorder %s1130_s29, %s1124_s9 }
  0x6c   : > { %906 = vmatpush3.bf16.msra.mxu0 %v1042_v14 }
  0x6d   : > { %928 = vmatpush3.bf16.msra.mxu1 %v1043_v15  ;;  %907 = vmatprep.subr.bf16.mxu0 %v1044_v16  ;;  %p1133_p0 = por %p1132_p11, %p1131_p12 }
  0x6e   : > { %929 = vmatprep.subr.bf16.mxu1 %v1045_v17 }
  0x6f   : > { %p1134_p5 = pnand %p1133_p0, %p1127_p8 }
  0x70   : > { %908 = vmatpush3.bf16.msra.mxu0 %v1046_v18 }
  0x71   : > { %930 = vmatpush3.bf16.msra.mxu1 %v1047_v19  ;;  %909 = vmatprep.subr.bf16.mxu0 %v1048_v20 }
  0x72   : > { %931 = vmatprep.subr.bf16.mxu1 %v1049_v21 }
  0x74   : > { %910 = vmatpush3.bf16.msra.mxu0 %v1050_v22 }
  0x75   : > { %932 = vmatpush3.bf16.msra.mxu1 %v1051_v23  ;;  %911 = vmatprep.subr.bf16.mxu0 %v1052_v24 }
  0x76   : > { %933 = vmatprep.subr.bf16.mxu1 %v1053_v25 }
  0x78   : > { %912 = vmatpush3.bf16.msra.mxu0 %v1054_v26 }
  0x79   : > { %934 = vmatpush3.bf16.msra.mxu1 %v1055_v27  ;;  %913 = vmatprep.subr.bf16.mxu0 %v1056_v28 }
  0x7a   : > { %935 = vmatprep.subr.bf16.mxu1 %v1057_v29 }
  0x7c   : > { %914 = vmatpush3.bf16.msra.mxu0 %v1058_v30 }
  0x7d   : > { %936 = vmatpush3.bf16.msra.mxu1 %v1059_v31 }
  0x7f   : > { %583 = vmatmul.mubr.bf16.vlgmr.msra.gmra.mrb[0].mxu0 %v1060_v32 }
  0x80   : > { %624 = vmatmul.mubr.bf16.vlgmr.msra.gmra.mrb[0].mxu1 %v1063_v34 }
 0x152   : > { %v915_v37 = vpop.f32.mrb[0].mxu0 }
 0x153   : > { %v937_v38 = vpop.f32.mrb[0].mxu1  ;;  %v916_v40 = vpop.f32.mrb[1].mxu0 }
 0x154   : > { %v917_v41 = vadd.f32 %v916_v40, %v915_v37  ;;  %v938_v42 = vpop.f32.mrb[1].mxu1  ;;  %v918_v43 = vpop.f32.mrb[2].mxu0 }
 0x155   : > { %v939_v44 = vadd.f32 %v938_v42, %v937_v38  ;;  %v940_v45 = vpop.f32.mrb[2].mxu1  ;;  %v919_v46 = vpop.f32.mrb[3].mxu0 }
 0x156   : > { %v585_v47 = vadd.f32 %v917_v41, %v845_v39  ;;  %v920_v48 = vadd.f32 %v919_v46, %v918_v43  ;;  %v941_v49 = vpop.f32.mrb[3].mxu1 }
 0x157   : > { %v942_v50 = vadd.f32 %v941_v49, %v940_v45 }
 0x158   : > { %v626_v51 = vadd.f32 %v939_v44, %v585_v47  ;;  %v588_v52 = vadd.f32 %v920_v48, %v845_v39 }
 0x15a   : > { %v632_v53 = vmax.f32 %v626_v51, 0.0  ;;  %v629_v54 = vadd.f32 %v942_v50, %v588_v52 }
 0x15c   : > { %v633_v55 = vmax.f32 %v629_v54, 0.0  ;;  %v634_v56 = vmin.f32 %v632_v53, 6.0 }
 0x15e   : > { %v635_v57 = vmin.f32 %v633_v55, 6.0 }
 0x160   : > { %v897_v58 = vpack.c.bf16 %v635_v57, %v634_v56  ;;  %v665_v59 = vadd.f32 %v635_v57, %v634_v56 }
 0x162   : > { %898 = vst [vmem:[%s253_s22] sm:$0xff] %v897_v58   ;;  %v666_v60 = vrot.slane %v665_v59, 4 }
 0x163   : > { %1137 = shalt.err (!%p1134_p5)
}
 0x164   : > { %s1138_s25 = scalar_lea.hbm %s1462_s30, 128  ;;  %s1142_s21 = scalar_lea.hbm %s1549_s3, 256 }
 0x165   : > { %p1139_p9 = scmp.ne.s32.totalorder %s1462_s30, %s1138_s25  ;;  %p1143_p3 = scmp.lt.u32.totalorder %s1462_s30, %s1549_s3 }
 0x166   : > { %p1144_p7 = scmp.lt.u32.totalorder %s1142_s21, %s1138_s25  ;;  %p1146_p4 = scmp.lt.u32.totalorder %s1138_s25, %s1462_s30 }
 0x167   : > { %p1140_p1 = pnand %p1139_p9, %p1376_p10 }
 0x168   : > { %p1145_p13 = por %p1144_p7, %p1143_p3 }
 0x169   : > { %p1141_p2 = pneg %p1140_p1 }
 0x16a   : > { %p1147_p6 = por %p1146_p4, %p1145_p13 }
 0x16c   : > { %p1148_p8 = pnand %p1147_p6, %p1141_p2 }
 0x16e   : > { %1151 = shalt.err (!%p1148_p8)
}
 0x16f   : > { %s1252_s24 = smov 64   ;;  %s1253_s9 = smov 4   ;;  %v667_v61 = vadd.f32 %v666_v60, %v665_v59  ;;  %v672_v1 = vld [vmem:[%s1451_s23] sm:$0x1] }
 0x170   : > { %949 = dma.vmem_to_hbm [thread:$0]  (%p1376_p10), %s1464_s28, 128, %s1462_s30, %s676_s6, %s1252_s24, %s1252_s24, %s1253_s9  }
 0x171   : > { %v668_v62 = vrot.slane %v667_v61, 2  ;;  %s887_s11 = sshll.u32 %s1234_s18, 4  ;;  %s711_s12 = sshll.u32 %s1451_s23, 4  ;;  %s1498_s12 = int_to_ptr.vmem [resolvable:$true] %s711_s12 }
 0x172   : > { %s1496_s27 = scalar_lea.hbm %s1550_s4, %s887_s11  ;;  %s681_s28 = scalar_lea.sflag [#allocation9], %s1432_s7 }
 0x173   : > { %v669_v63 = vadd.f32 %v668_v62, %v667_v61  ;;  %s1152_s30 = scalar_lea.vmem %s1498_s12, 16  ;;  %s1254_s18 = smov [#allocation8]  }
 0x174   : > { %p1153_p12 = scmp.ne.s32.totalorder %s1498_s12, %s1152_s30  ;;  %s1156_s6 = sshll.u32 %s1254_s18, 4  ;;  %s1157_s6 = int_to_ptr.vmem [resolvable:$false] %s1156_s6 }
 0x175   : > { %v670_v0 = vrot.slane %v669_v63, 1  ;;  %s1158_s14 = scalar_lea.vmem %s1157_s6, 32  ;;  %p1159_p5 = scmp.lt.s32.totalorder %s1498_s12, %s1157_s6 }
 0x176   : > { %p1154_p11 = pnand %p1153_p12, %p1376_p10  ;;  %p1160_p9 = scmp.lt.s32.totalorder %s1158_s14, %s1152_s30 }
 0x177   : > { %v671_v2 = vadd.f32 %v670_v0, %v669_v63 }
 0x178   : > { %p1155_p0 = pneg %p1154_p11  ;;  %p1161_p1 = por %p1160_p9, %p1159_p5 }
 0x179   : > { %v673_v3 = vadd.f32 %v672_v1, %v671_v2 }
 0x17a   : > { %p1162_p2 = pnand %p1161_p1, %p1155_p0 }
 0x17b   : > { %674 = vst [vmem:[%s1451_s23] sm:$0x1] %v673_v3 }
 0x17c   : > { %1165 = shalt.err (!%p1162_p2)
}
 0x17d   : > { %s1166_s7 = scalar_lea.hbm %s1496_s27, 16  ;;  %s1170_s22 = scalar_lea.hbm %s1550_s4, 32 }
 0x17e   : > { %p1167_p3 = scmp.ne.s32.totalorder %s1496_s27, %s1166_s7  ;;  %p1171_p4 = scmp.lt.u32.totalorder %s1496_s27, %s1550_s4 }
 0x17f   : > { %p1172_p6 = scmp.lt.u32.totalorder %s1170_s22, %s1166_s7  ;;  %p1174_p12 = scmp.lt.u32.totalorder %s1166_s7, %s1496_s27 }
 0x180   : > { %p1168_p7 = pnand %p1167_p3, %p1376_p10 }
 0x181   : > { %p1173_p8 = por %p1172_p6, %p1171_p4 }
 0x182   : > { %p1169_p13 = pneg %p1168_p7 }
 0x183   : > { %p1175_p11 = por %p1174_p12, %p1173_p8 }
 0x185   : > { %p1176_p0 = pnand %p1175_p11, %p1169_p13 }
 0x187   : > { %1179 = shalt.err (!%p1176_p0)
}
 0x188   : > { %950 = dma.vmem_to_hbm [thread:$0]  (%p1376_p10), %s1498_s12, 16, %s1496_s27, %s681_s28  }
 0x189 PF: > { %s723_s9 = sand.u32 1, %s1222_s15   ;;  %p1568_p5 = scmp.ne.s32.totalorder %s1558_s26, 0 }
 0x18a   : > { %p1569_p9 = scmp.ge.s32.totalorder %s1242_s20, 2  ;;  %s724_s11 = scalar_lea.sflag [#allocation4], %s723_s9 }
 0x18c   : > { %p962_p1 = pnand %p1569_p9, %p1568_p5 }
 0x18e   : > { %1213 = dma.done.wait (!%p962_p1), %s724_s11, 128  }
 0x18f   : > { %1215 = vsyncadd (!%p962_p1), %s724_s11, 4294967168  ;;  %s733_s29 = scalar_lea.sflag [#allocation9], %s723_s9 }
 0x190   : > { %1217 = dma.done.wait (!%p962_p1), %s733_s29, 16  }
 0x191   : > { %1219 = vsyncadd (!%p962_p1), %s733_s29, 4294967280  ;;  %s25_s20 = sadd.s32 1, %s1242_s20   ;;  %s1570_s15 = smov %s1226_s16 }
 0x192   : > { %p22_p2 = scmp.ge.s32.totalorder %s25_s20, 4   ;;  %s1571_s16 = smov %s1230_s17 }
 0x193   : > { %s1572_s17 = smov %s1385_s10  ;;  %s1573_s18 = smov %s1238_s19 }
 0x194   : > { %s1574_s19 = smov %s1576_s5  ;;  %24 = sbr.rel (!%p22_p2) target bundleno = 9 (0x9), region = 102 }
 0x19b   :  { %737 = vsyncpa [#allocation3], 1 }
 0x19c   :  { %739 = vsyncpa [#allocation3 + $0x1], 1 }
 0x19d   :  { %740 = vsyncpa [#allocation6], 1 }
 0x19e   :  { %741 = vsyncpa [#allocation4], 1 }
 0x19f   :  { %743 = vsyncpa [#allocation4 + $0x1], 1 }
 0x1a0   :  { %744 = vsyncpa [#allocation9], 1 }
 0x1a1   :  { %746 = vsyncpa [#allocation9 + $0x1], 1 }

</bundles_post_ra>
